<compile_context>
chip_gen: v6e
topology: v6e:2x2x1
jax: 0.10.0
libtpu: 0.0.40
codegen_flags: <defaults>
</compile_context>

<pallas_src>
import functools

import jax
import jax.numpy as jnp
from jax.experimental import pallas as pl
from jax.experimental.pallas import tpu as pltpu

HIDDEN = 512
_LANE = 128
_SUBLANE = 8


def _round_up(n, m):
    return ((n + m - 1) // m) * m


# ---------------------------------------------------------------------------
# Kernel: one fused 3-layer MLP over a (block_b, d_in_pad) batch tile.
# ---------------------------------------------------------------------------
def _mlp_kernel(x_ref, w1_ref, b1_ref, w2_ref, b2_ref, w3_ref, b3_ref, o_ref):
    # Layer 1: bf16 MXU matmul, f32 accumulation; bias + ReLU in f32 (VPU).
    h1 = jnp.dot(x_ref[...], w1_ref[...], preferred_element_type=jnp.float32)
    h1 = jnp.maximum(h1 + b1_ref[...], 0.0)
    # Layer 2.
    h2 = jnp.dot(h1.astype(jnp.bfloat16), w2_ref[...],
                 preferred_element_type=jnp.float32)
    h2 = jnp.maximum(h2 + b2_ref[...], 0.0)
    # Layer 3 (no activation), lane-dense padded output.
    h3 = jnp.dot(h2.astype(jnp.bfloat16), w3_ref[...],
                 preferred_element_type=jnp.float32)
    o_ref[...] = (h3 + b3_ref[...]).astype(o_ref.dtype)


# ---------------------------------------------------------------------------
# Generation-aware configuration (trace-time queries, with safe fallbacks).
# ---------------------------------------------------------------------------
def _chip_config():
    """Returns (default max block_b, physical VMEM bytes) for the local TPU."""
    vmem_cap = 64 << 20  # conservative default (v7x per-TensorCore)
    try:
        vmem_cap = int(pltpu.get_tpu_info().vmem_capacity_bytes)
    except Exception:
        pass
    kind = ""
    try:
        kind = jax.devices()[0].device_kind.lower()
    except Exception:
        pass
    # v5e: 4x128^2 MXU + single vector-store slot -> keep M tiles modest.
    if "v5 lite" in kind or "v5e" in kind:
        return 256, vmem_cap
    # v6e / v7x: big M tiles amortize the ~0.35us per-grid-step overhead.
    return 512, vmem_cap


def _pick_block_b(batch, max_block_b):
    if batch > max_block_b:
        return max_block_b                      # multi-step grid (max_block_b % 16 == 0)
    if batch >= 256:
        # Split large single-tile batches into >= 2 grid steps so the "parallel"
        # batch axis can shard across both v7x TensorCores (costs one extra
        # ~0.35us step on single-core v5e/v6e -- negligible).
        return _round_up(-(-batch // 2), 16)
    # Small batch: one tile covering the 8-row-rounded batch (no wasted rows).
    return _round_up(max(batch, _SUBLANE), _SUBLANE)


# ---------------------------------------------------------------------------
# One-time parameter prep (hoisted out of the per-call forward).
# ---------------------------------------------------------------------------
def prepare_params(w1, b1, w2, b2, w3, b3):
    """Pads d_in (w1 rows) and d_out (w3/b3 cols) to multiples of 128, reshapes
    biases to (1, fan_out), and casts weights to bf16 (biases stay f32).
    Returns (params_tuple, original_d_out)."""
    d_in = w1.shape[0]
    d_out = w3.shape[1]
    assert w1.shape[1] == HIDDEN and w2.shape == (HIDDEN, HIDDEN)
    assert w3.shape[0] == HIDDEN
    d_in_pad = _round_up(d_in, _LANE)
    d_out_pad = _round_up(d_out, _LANE)

    def row(b, n):
        return jnp.asarray(b, jnp.float32).reshape(1, n)

    w1p = jnp.pad(jnp.asarray(w1, jnp.float32), ((0, d_in_pad - d_in), (0, 0)))
    w3p = jnp.pad(jnp.asarray(w3, jnp.float32), ((0, 0), (0, d_out_pad - d_out)))
    b3p = jnp.pad(row(b3, d_out), ((0, 0), (0, d_out_pad - d_out)))

    params = (
        w1p.astype(jnp.bfloat16), row(b1, HIDDEN),
        jnp.asarray(w2, jnp.bfloat16), row(b2, HIDDEN),
        w3p.astype(jnp.bfloat16), b3p,
    )
    return params, d_out


# ---------------------------------------------------------------------------
# Forward pass.
# ---------------------------------------------------------------------------
@functools.partial(jax.jit, static_argnames=("d_out", "block_b"))
def discriminator_forward(x, w1, b1, w2, b2, w3, b3, *, d_out, block_b=None):
    """Fused forward. Expects params produced by prepare_params (padded, bf16)."""
    B, d_in = x.shape
    d_in_pad = w1.shape[0]
    d_out_pad = w3.shape[1]

    max_block_b, vmem_cap = _chip_config()
    if block_b is None:
        block_b = _pick_block_b(B, max_block_b)
    block_b = _round_up(block_b, _SUBLANE)

    # Pad batch rows up to the tile, input features up to the lane-padded width
    # expected by w1, and stream x as bf16 (halves the per-step x DMA bytes).
    B_pad = _round_up(B, block_b)
    if (B_pad, d_in_pad) != (B, d_in):
        x = jnp.pad(x, ((0, B_pad - B), (0, d_in_pad - d_in)))
    x = x.astype(jnp.bfloat16)

    grid = (B_pad // block_b,)

    def _const(shape):
        # Grid-invariant operand: fetched once, single pipeline buffer.
        return pl.BlockSpec(shape, lambda i: (0, 0), pipeline_mode=pl.Buffered(1))

    # TODO(synk): for very wide inputs (d_in_pad*HIDDEN*2 bytes > ~20 MiB on
    # v7x), add a second "arbitrary" grid axis over d_in with an f32 VMEM
    # accumulator for layer 1 instead of keeping w1 fully resident.
    in_specs = [
        pl.BlockSpec((block_b, d_in_pad), lambda i: (i, 0)),   # x tile (bf16)
        _const((d_in_pad, HIDDEN)),                            # w1 (bf16)
        _const((1, HIDDEN)),                                   # b1 (f32)
        _const((HIDDEN, HIDDEN)),                              # w2 (bf16)
        _const((1, HIDDEN)),                                   # b2 (f32)
        _const((HIDDEN, d_out_pad)),                           # w3 (bf16, lane-padded)
        _const((1, d_out_pad)),                                # b3 (f32, lane-padded)
    ]
    out_spec = pl.BlockSpec((block_b, d_out_pad), lambda i: (i, 0))

    # ---- VMEM budget: single-buffered bf16 weights + double-buffered I/O ----
    bf16, f32 = 2, 4
    w_bytes = bf16 * (d_in_pad * HIDDEN + HIDDEN * HIDDEN + HIDDEN * d_out_pad)
    bias_bytes = f32 * (2 * HIDDEN + d_out_pad)
    io_bytes = 2 * (bf16 * block_b * d_in_pad + f32 * block_b * d_out_pad)
    act_bytes = 4 * f32 * block_b * HIDDEN            # h1/h2 staging headroom
    vmem_est = w_bytes + bias_bytes + io_bytes + act_bytes + (8 << 20)
    # Clamp below physical VMEM with headroom (v7x has only 64 MiB / TC).
    vmem_limit = int(min(vmem_cap - (8 << 20), max(32 << 20, vmem_est)))
    vmem_limit = max(vmem_limit, 16 << 20)

    cost = pl.CostEstimate(
        flops=2 * B_pad * (d_in_pad * HIDDEN + HIDDEN * HIDDEN
                           + HIDDEN * d_out_pad),
        transcendentals=0,
        bytes_accessed=(bf16 * (B_pad * d_in_pad + d_in_pad * HIDDEN
                                + HIDDEN * HIDDEN + HIDDEN * d_out_pad)
                        + f32 * (B_pad * d_out_pad + 2 * HIDDEN + d_out_pad)),
    )

    out = pl.pallas_call(
        _mlp_kernel,
        out_shape=jax.ShapeDtypeStruct((B_pad, d_out_pad), jnp.float32),
        grid_spec=pltpu.PrefetchScalarGridSpec(
            num_scalar_prefetch=0,
            grid=grid,
            in_specs=in_specs,
            out_specs=out_spec,
        ),
        compiler_params=pltpu.CompilerParams(
            dimension_semantics=("parallel",),
            vmem_limit_bytes=vmem_limit,
        ),
        cost_estimate=cost,
    )(x, w1, b1, w2, b2, w3, b3)

    # Strip batch and lane padding.
    return out[:B, :d_out]


# ---------------------------------------------------------------------------
# Reference / init helpers.
# ---------------------------------------------------------------------------
def init_params(key, input_dim, output_dim):
    """Deterministic init mimicking PyTorch nn.Linear (uniform +/-1/sqrt(fan_in)).
    Biases are PyTorch-style 1-D vectors; prepare_params reshapes them."""
    ks = jax.random.split(key, 6)

    def linear(kw, kb, fan_in, fan_out):
        bound = 1.0 / jnp.sqrt(jnp.float32(fan_in))
        w = jax.random.uniform(kw, (fan_in, fan_out), jnp.float32, -bound, bound)
        b = jax.random.uniform(kb, (fan_out,), jnp.float32, -bound, bound)
        return w, b

    w1, b1 = linear(ks[0], ks[1], input_dim, HIDDEN)
    w2, b2 = linear(ks[2], ks[3], HIDDEN, HIDDEN)
    w3, b3 = linear(ks[4], ks[5], HIDDEN, output_dim)
    return w1, b1, w2, b2, w3, b3


def reference_forward(x, w1, b1, w2, b2, w3, b3):
    h = jnp.maximum(x @ w1 + b1, 0.0)
    h = jnp.maximum(h @ w2 + b2, 0.0)
    return h @ w3 + b3


if __name__ == "__main__":
    key = jax.random.PRNGKey(0)
    k_x, k_p = jax.random.split(key)

    batch, input_dim, output_dim = 16, 32, 8
    x = jax.random.normal(k_x, (batch, input_dim), dtype=jnp.float32)
    raw_params = init_params(k_p, input_dim, output_dim)

    # One-time pad + bf16 cast (hoisted out of the per-call forward).
    params, d_out = prepare_params(*raw_params)

    out = discriminator_forward(x, *params, d_out=d_out)
    out = jax.block_until_ready(out)

    ref = reference_forward(x, *raw_params)
    assert out.shape == (batch, output_dim)
    # bf16 MXU operands => tolerance loosened from 1e-4 to ~5e-2 (per review).
    assert jnp.allclose(out, ref, atol=5e-2, rtol=5e-2), "mismatch vs reference"

    print("KERNEL_OK")
</pallas_src>

<mosaic_0001>
module attributes {stable_mosaic.version = 11 : i64} {
  func.func @_mlp_kernel(%arg0: i32, %arg1: memref<16x128xbf16, #tpu.memory_space<vmem>>, %arg2: memref<128x512xbf16, #tpu.memory_space<vmem>>, %arg3: memref<1x512xf32, #tpu.memory_space<vmem>>, %arg4: memref<512x512xbf16, #tpu.memory_space<vmem>>, %arg5: memref<1x512xf32, #tpu.memory_space<vmem>>, %arg6: memref<512x128xbf16, #tpu.memory_space<vmem>>, %arg7: memref<1x128xf32, #tpu.memory_space<vmem>>, %arg8: memref<16x128xf32, #tpu.memory_space<vmem>>) attributes {dimension_semantics = [#tpu.dimension_semantics<parallel>], iteration_bounds = array<i64: 1>, scalar_prefetch = 0 : i64, scratch_operands = 0 : i64, tpu.core_type = #tpu.core_type<tc>, window_params = [{transform_indices = @transform_0, window_bounds = array<i64: 16, 128>}, {pipeline_mode = #tpu.pipeline_mode<synchronous>, transform_indices = @transform_1, window_bounds = array<i64: 128, 512>}, {pipeline_mode = #tpu.pipeline_mode<synchronous>, transform_indices = @transform_2, window_bounds = array<i64: 1, 512>}, {pipeline_mode = #tpu.pipeline_mode<synchronous>, transform_indices = @transform_3, window_bounds = array<i64: 512, 512>}, {pipeline_mode = #tpu.pipeline_mode<synchronous>, transform_indices = @transform_4, window_bounds = array<i64: 1, 512>}, {pipeline_mode = #tpu.pipeline_mode<synchronous>, transform_indices = @transform_5, window_bounds = array<i64: 512, 128>}, {pipeline_mode = #tpu.pipeline_mode<synchronous>, transform_indices = @transform_6, window_bounds = array<i64: 1, 128>}, {transform_indices = @transform_7, window_bounds = array<i64: 16, 128>}]} {
    %c0 = arith.constant 0 : index
    %c0_0 = arith.constant 0 : index
    %0 = vector.load %arg1[%c0, %c0_0] : memref<16x128xbf16, #tpu.memory_space<vmem>>, vector<16x128xbf16>
    %c0_1 = arith.constant 0 : index
    %c0_2 = arith.constant 0 : index
    %1 = vector.load %arg2[%c0_1, %c0_2] : memref<128x512xbf16, #tpu.memory_space<vmem>>, vector<128x512xbf16>
    %cst = arith.constant dense<0.000000e+00> : vector<16x512xf32>
    %2 = tpu.matmul %0, %1, %cst {dimension_numbers = #tpu.dot_dimension_numbers<[1], [0], [0], [1], [0, 0, 1, 1], [], []>} : vector<16x128xbf16>, vector<128x512xbf16>, vector<16x512xf32> -> vector<16x512xf32>
    %c0_3 = arith.constant 0 : index
    %c0_4 = arith.constant 0 : index
    %3 = vector.load %arg3[%c0_3, %c0_4] : memref<1x512xf32, #tpu.memory_space<vmem>>, vector<1x512xf32>
    %4 = vector.broadcast %3 : vector<1x512xf32> to vector<16x512xf32>
    %5 = arith.addf %2, %4 : vector<16x512xf32>
    %cst_5 = arith.constant 0.000000e+00 : f32
    %6 = vector.broadcast %cst_5 : f32 to vector<16x512xf32>
    %7 = arith.maximumf %5, %6 : vector<16x512xf32>
    %8 = arith.truncf %7 : vector<16x512xf32> to vector<16x512xbf16>
    %c0_6 = arith.constant 0 : index
    %c0_7 = arith.constant 0 : index
    %9 = vector.load %arg4[%c0_6, %c0_7] : memref<512x512xbf16, #tpu.memory_space<vmem>>, vector<512x512xbf16>
    %cst_8 = arith.constant dense<0.000000e+00> : vector<16x512xf32>
    %10 = tpu.matmul %8, %9, %cst_8 {dimension_numbers = #tpu.dot_dimension_numbers<[1], [0], [0], [1], [0, 0, 1, 1], [], []>} : vector<16x512xbf16>, vector<512x512xbf16>, vector<16x512xf32> -> vector<16x512xf32>
    %c0_9 = arith.constant 0 : index
    %c0_10 = arith.constant 0 : index
    %11 = vector.load %arg5[%c0_9, %c0_10] : memref<1x512xf32, #tpu.memory_space<vmem>>, vector<1x512xf32>
    %12 = vector.broadcast %11 : vector<1x512xf32> to vector<16x512xf32>
    %13 = arith.addf %10, %12 : vector<16x512xf32>
    %cst_11 = arith.constant 0.000000e+00 : f32
    %14 = vector.broadcast %cst_11 : f32 to vector<16x512xf32>
    %15 = arith.maximumf %13, %14 : vector<16x512xf32>
    %16 = arith.truncf %15 : vector<16x512xf32> to vector<16x512xbf16>
    %c0_12 = arith.constant 0 : index
    %c0_13 = arith.constant 0 : index
    %17 = vector.load %arg6[%c0_12, %c0_13] : memref<512x128xbf16, #tpu.memory_space<vmem>>, vector<512x128xbf16>
    %cst_14 = arith.constant dense<0.000000e+00> : vector<16x128xf32>
    %18 = tpu.matmul %16, %17, %cst_14 {dimension_numbers = #tpu.dot_dimension_numbers<[1], [0], [0], [1], [0, 0, 1, 1], [], []>} : vector<16x512xbf16>, vector<512x128xbf16>, vector<16x128xf32> -> vector<16x128xf32>
    %c0_15 = arith.constant 0 : index
    %c0_16 = arith.constant 0 : index
    %19 = vector.load %arg7[%c0_15, %c0_16] : memref<1x128xf32, #tpu.memory_space<vmem>>, vector<1x128xf32>
    %20 = vector.broadcast %19 : vector<1x128xf32> to vector<16x128xf32>
    %21 = arith.addf %18, %20 : vector<16x128xf32>
    %c0_17 = arith.constant 0 : index
    %c0_18 = arith.constant 0 : index
    %22 = vector.load %arg8[%c0_17, %c0_18] : memref<16x128xf32, #tpu.memory_space<vmem>>, vector<16x128xf32>
    tpu.vector_store %arg8[%c0_17, %c0_18], %21 {strides = array<i32>} : memref<16x128xf32, #tpu.memory_space<vmem>>, vector<16x128xf32>,
    return
  }
  func.func @transform_0(%arg0: i32) -> (i32, i32) {
    %c0_i32 = arith.constant 0 : i32
    %c0_i32_0 = arith.constant 0 : i32
    return %arg0, %c0_i32 : i32, i32
  }
  func.func @transform_1(%arg0: i32) -> (i32, i32) {
    %c0_i32 = arith.constant 0 : i32
    %c0_i32_0 = arith.constant 0 : i32
    %c0_i32_1 = arith.constant 0 : i32
    return %c0_i32, %c0_i32_0 : i32, i32
  }
  func.func @transform_2(%arg0: i32) -> (i32, i32) {
    %c0_i32 = arith.constant 0 : i32
    %c0_i32_0 = arith.constant 0 : i32
    %c0_i32_1 = arith.constant 0 : i32
    return %c0_i32, %c0_i32_0 : i32, i32
  }
  func.func @transform_3(%arg0: i32) -> (i32, i32) {
    %c0_i32 = arith.constant 0 : i32
    %c0_i32_0 = arith.constant 0 : i32
    %c0_i32_1 = arith.constant 0 : i32
    return %c0_i32, %c0_i32_0 : i32, i32
  }
  func.func @transform_4(%arg0: i32) -> (i32, i32) {
    %c0_i32 = arith.constant 0 : i32
    %c0_i32_0 = arith.constant 0 : i32
    %c0_i32_1 = arith.constant 0 : i32
    return %c0_i32, %c0_i32_0 : i32, i32
  }
  func.func @transform_5(%arg0: i32) -> (i32, i32) {
    %c0_i32 = arith.constant 0 : i32
    %c0_i32_0 = arith.constant 0 : i32
    %c0_i32_1 = arith.constant 0 : i32
    return %c0_i32, %c0_i32_0 : i32, i32
  }
  func.func @transform_6(%arg0: i32) -> (i32, i32) {
    %c0_i32 = arith.constant 0 : i32
    %c0_i32_0 = arith.constant 0 : i32
    %c0_i32_1 = arith.constant 0 : i32
    return %c0_i32, %c0_i32_0 : i32, i32
  }
  func.func @transform_7(%arg0: i32) -> (i32, i32) {
    %c0_i32 = arith.constant 0 : i32
    %c0_i32_0 = arith.constant 0 : i32
    return %arg0, %c0_i32 : i32, i32
  }
}

</mosaic_0001>

<bundles_post_ra>
// kernel: discriminator_forward.1
= control target key start
LH: loop header
LB: loop body
LE: loop exit
PB: predicated region body
PF: predicated region fallthrough
CT: control target
= control target key end

     0   :  { %12 = vsyncpa [#allocation3], 0  ;;  %s2403_s0 = inlined_call_operand.vmem [shape: bf16[16,128], index: 0, kind: input, shape index: {}]   ;;  %s2404_s1 = inlined_call_operand.hbm [shape: bf16[128,512], index: 1, kind: input, shape index: {}]   ;;  %s2405_s2 = inlined_call_operand.vmem [shape: f32[1,512], index: 2, kind: input, shape index: {}]   ;;  %s2406_s3 = inlined_call_operand.hbm [shape: bf16[512,512], index: 3, kind: input, shape index: {}]   ;;  %s2407_s4 = inlined_call_operand.vmem [shape: f32[1,512], index: 4, kind: input, shape index: {}]   ;;  %s2408_s5 = inlined_call_operand.hbm [shape: bf16[512,128], index: 5, kind: input, shape index: {}]   ;;  %s2409_s6 = inlined_call_operand.vmem [shape: f32[1,128], index: 6, kind: input, shape index: {}]   ;;  %s2410_s7 = inlined_call_operand.vmem [shape: f32[16,128], index: 7, kind: output, shape index: {}]  }
   0x1   :  { %13 = vsyncpa [#allocation5], 0  ;;  %s2298_s24 = smov [#allocation4]   ;;  %s2299_s26 = smov [#allocation2]  }
   0x2   :  { %s35_s25 = sshll.u32 %s2298_s24, 4  ;;  %s21_s27 = sshll.u32 %s2299_s26, 4  ;;  %s36_s25 = int_to_ptr.vmem [resolvable:$true] %s35_s25  ;;  %s22_s27 = int_to_ptr.vmem [resolvable:$true] %s21_s27 }
   0x3   :  { %s2242_s28 = scalar_lea.vmem %s36_s25, 16384  ;;  %p2247_p1 = scmp.lt.s32.totalorder %s36_s25, %s36_s25 }
   0x4   :  { %p2243_p0 = scmp.ne.s32.totalorder %s36_s25, %s2242_s28  ;;  %p2248_p2 = scmp.lt.s32.totalorder %s2242_s28, %s2242_s28 }
   0x6   :  { %p2249_p3 = por %p2248_p2, %p2247_p1 }
   0x8   :  { %p2250_p4 = pnand %p2249_p3, %p2243_p0 }
   0xa   :  { %2253 = shalt.err (!%p2250_p4)
}
   0xb   :  { %s2300_s29 = smov 256   ;;  %s2301_s30 = smov 16  }
   0xc   :  { %41 = dma.hbm_to_vmem [thread:$0]  %s2406_s3, 16384, %s36_s25, [#allocation5], %s2300_s29, %s2300_s29, %s2301_s30  }
   0xd   :  { %s2262_s10 = scalar_lea.vmem %s22_s27, 4096  ;;  %p2267_p6 = scmp.lt.s32.totalorder %s22_s27, %s22_s27 }
   0xe   :  { %p2263_p5 = scmp.ne.s32.totalorder %s22_s27, %s2262_s10  ;;  %p2268_p7 = scmp.lt.s32.totalorder %s2262_s10, %s2262_s10 }
  0x10   :  { %p2269_p8 = por %p2268_p7, %p2267_p6 }
  0x12   :  { %p2270_p9 = pnand %p2269_p8, %p2263_p5 }
  0x14   :  { %2273 = shalt.err (!%p2270_p9)
}
  0x15   :  { %27 = dma.hbm_to_vmem [thread:$0]  %s2404_s1, 4096, %s22_s27, [#allocation3], %s2300_s29, %s2300_s29, %s2301_s30  }
  0x16   :  { %s2302_s13 = smov [#allocation6]  }
  0x17   :  { %s49_s14 = sshll.u32 %s2302_s13, 4  ;;  %s50_s14 = int_to_ptr.vmem [resolvable:$true] %s49_s14 }
  0x18   :  { %s2282_s15 = scalar_lea.vmem %s50_s14, 4096  ;;  %p2287_p11 = scmp.lt.s32.totalorder %s50_s14, %s50_s14 }
  0x19   :  { %p2283_p10 = scmp.ne.s32.totalorder %s50_s14, %s2282_s15  ;;  %p2288_p12 = scmp.lt.s32.totalorder %s2282_s15, %s2282_s15 }
  0x1b   :  { %p2289_p13 = por %p2288_p12, %p2287_p11 }
  0x1d   :  { %p2290_p0 = pnand %p2289_p13, %p2283_p10 }
  0x1f   :  { %2293 = shalt.err (!%p2290_p0)
}
  0x20   :  { %s2303_s3 = smov 64   ;;  %s2304_s16 = smov 4  }
  0x21   :  { %55 = dma.hbm_to_vmem [thread:$0]  %s2408_s5, 4096, %s50_s14, [#allocation5], %s2303_s3, %s2303_s3, %s2304_s16  }
  0x22   :  { %2294 = dma.done.wait [#allocation3], 4096  }
  0x23   :  { %2295 = vsyncadd [#allocation3], 4294963200 }
  0x24   :  { %2296 = dma.done.wait [#allocation5], 20480  }
  0x25   :  { %2297 = vsyncadd [#allocation5], 4294946816  ;;  %v2305_v0 = vmov 0   ;;  %v1961_v1 = vld [vmem:[#allocation2 + $0xe4] ss:$16 sps:$4 sm:$0xff]  }
  0x26   :  { %322 = vmatprep.mubr.bf16.mxu0 %v2305_v0  ;;  %365 = vmatprep.mubr.bf16.mxu1 %v2305_v0  ;;  %v1963_v2 = vld [vmem:[#allocation2 + $0xec] ss:$16 sps:$4 sm:$0xff]   ;;  %v1965_v3 = vld [vmem:[#allocation2 + $0xe0] ss:$16 sps:$4 sm:$0xff]   ;;  %v1966_v4 = vld [vmem:[#allocation2 + $0xe8] ss:$16 sps:$4 sm:$0xff]  }
  0x27   :  { %290 = vmatprep.subr.bf16.mxu0 %v1961_v1  ;;  %333 = vmatprep.subr.bf16.mxu1 %v1963_v2  ;;  %v1967_v5 = vld [vmem:[#allocation2 + $0xc4] ss:$16 sps:$4 sm:$0xff]   ;;  %v1969_v6 = vld [vmem:[#allocation2 + $0xcc] ss:$16 sps:$4 sm:$0xff]   ;;  %v1971_v7 = vld [vmem:[#allocation2 + $0xc0] ss:$16 sps:$4 sm:$0xff]  }
  0x28   :  { %291 = vmatpush1.bf16.msra.mxu0 %v1965_v3  ;;  %334 = vmatpush1.bf16.msra.mxu1 %v1966_v4  ;;  %v1972_v8 = vld [vmem:[#allocation2 + $0xc8] ss:$16 sps:$4 sm:$0xff]   ;;  %v1973_v9 = vld [vmem:[#allocation2 + $0xa4] ss:$16 sps:$4 sm:$0xff]   ;;  %v1975_v10 = vld [vmem:[#allocation2 + $0xac] ss:$16 sps:$4 sm:$0xff]  }
  0x29   :  { %292 = vmatprep.subr.bf16.mxu0 %v1967_v5  ;;  %335 = vmatprep.subr.bf16.mxu1 %v1969_v6  ;;  %v1977_v11 = vld [vmem:[#allocation2 + $0xa0] ss:$16 sps:$4 sm:$0xff]   ;;  %v1978_v12 = vld [vmem:[#allocation2 + $0xa8] ss:$16 sps:$4 sm:$0xff]   ;;  %v1979_v13 = vld [vmem:[#allocation2 + $0x84] ss:$16 sps:$4 sm:$0xff]  }
  0x2a   :  { %v1981_v14 = vld [vmem:[#allocation2 + $0x8c] ss:$16 sps:$4 sm:$0xff]   ;;  %v1983_v15 = vld [vmem:[#allocation2 + $0x80] ss:$16 sps:$4 sm:$0xff]   ;;  %v1984_v16 = vld [vmem:[#allocation2 + $0x88] ss:$16 sps:$4 sm:$0xff]  }
  0x2b   :  { %v1985_v17 = vld [vmem:[#allocation2 + $0x64] ss:$16 sps:$4 sm:$0xff]   ;;  %v1987_v18 = vld [vmem:[#allocation2 + $0x6c] ss:$16 sps:$4 sm:$0xff]   ;;  %v1989_v19 = vld [vmem:[#allocation2 + $0x60] ss:$16 sps:$4 sm:$0xff]  }
  0x2c   :  { %293 = vmatpush1.bf16.msra.mxu0 %v1971_v7  ;;  %336 = vmatpush1.bf16.msra.mxu1 %v1972_v8  ;;  %v1990_v20 = vld [vmem:[#allocation2 + $0x68] ss:$16 sps:$4 sm:$0xff]   ;;  %v1991_v21 = vld [vmem:[#allocation2 + $0x44] ss:$16 sps:$4 sm:$0xff]   ;;  %v1993_v22 = vld [vmem:[#allocation2 + $0x4c] ss:$16 sps:$4 sm:$0xff]  }
  0x2d   :  { %294 = vmatprep.subr.bf16.mxu0 %v1973_v9  ;;  %337 = vmatprep.subr.bf16.mxu1 %v1975_v10  ;;  %v1995_v23 = vld [vmem:[#allocation2 + $0x40] ss:$16 sps:$4 sm:$0xff]   ;;  %v1996_v24 = vld [vmem:[#allocation2 + $0x48] ss:$16 sps:$4 sm:$0xff]   ;;  %v1997_v25 = vld [vmem:[#allocation2 + $0x24] ss:$16 sps:$4 sm:$0xff]  }
  0x2e   :  { %v1999_v26 = vld [vmem:[#allocation2 + $0x2c] ss:$16 sps:$4 sm:$0xff]   ;;  %v2001_v27 = vld [vmem:[#allocation2 + $0x20] ss:$16 sps:$4 sm:$0xff]   ;;  %v2002_v28 = vld [vmem:[#allocation2 + $0x28] ss:$16 sps:$4 sm:$0xff]  }
  0x2f   :  { %v2003_v29 = vld [vmem:[#allocation2 + $0x4] ss:$16 sps:$4 sm:$0xff]   ;;  %v2005_v30 = vld [vmem:[#allocation2 + $0xc] ss:$16 sps:$4 sm:$0xff]   ;;  %v2007_v31 = vld [vmem:[#allocation2] ss:$16 sps:$4 sm:$0xff]  }
  0x30   :  { %295 = vmatpush1.bf16.msra.mxu0 %v1977_v11  ;;  %338 = vmatpush1.bf16.msra.mxu1 %v1978_v12  ;;  %v2008_v32 = vld [vmem:[#allocation2 + $0x8] ss:$16 sps:$4 sm:$0xff]   ;;  %v2012_v33 = vld [vmem:[#allocation4 + $0xe4] ss:$16 sps:$4 sm:$0xff]   ;;  %v2010_v36 = vld [vmem:[#allocation4 + $0xe0] ss:$16 sps:$4 sm:$0xff]  }
  0x31   :  { %296 = vmatprep.subr.bf16.mxu0 %v1979_v13  ;;  %339 = vmatprep.subr.bf16.mxu1 %v1981_v14  ;;  %v2015_v34 = vld [vmem:[#allocation4 + $0x2e4] ss:$16 sps:$4 sm:$0xff]   ;;  %v2013_v37 = vld [vmem:[#allocation4 + $0x2e0] ss:$16 sps:$4 sm:$0xff]  }
  0x32   :  { %v2009_v35 = vld [vmem:[%s2403_s0] sm:$0xff]  }
  0x33   :  { %v2018_v38 = vld [vmem:[#allocation4 + $0xc4] ss:$16 sps:$4 sm:$0xff]   ;;  %v2016_v40 = vld [vmem:[#allocation4 + $0xc0] ss:$16 sps:$4 sm:$0xff]  }
  0x34   :  { %297 = vmatpush1.bf16.msra.mxu0 %v1983_v15  ;;  %340 = vmatpush1.bf16.msra.mxu1 %v1984_v16  ;;  %v2021_v39 = vld [vmem:[#allocation4 + $0x2c4] ss:$16 sps:$4 sm:$0xff]   ;;  %v2019_v41 = vld [vmem:[#allocation4 + $0x2c0] ss:$16 sps:$4 sm:$0xff]  }
  0x35   :  { %298 = vmatprep.subr.bf16.mxu0 %v1985_v17  ;;  %341 = vmatprep.subr.bf16.mxu1 %v1987_v18  ;;  %v2024_v42 = vld [vmem:[#allocation4 + $0xa4] ss:$16 sps:$4 sm:$0xff]   ;;  %v2022_v44 = vld [vmem:[#allocation4 + $0xa0] ss:$16 sps:$4 sm:$0xff]  }
  0x36   :  { %v2027_v43 = vld [vmem:[#allocation4 + $0x2a4] ss:$16 sps:$4 sm:$0xff]   ;;  %v2025_v45 = vld [vmem:[#allocation4 + $0x2a0] ss:$16 sps:$4 sm:$0xff]  }
  0x37   :  { %v2030_v46 = vld [vmem:[#allocation4 + $0x84] ss:$16 sps:$4 sm:$0xff]   ;;  %v2028_v48 = vld [vmem:[#allocation4 + $0x80] ss:$16 sps:$4 sm:$0xff]  }
  0x38   :  { %299 = vmatpush1.bf16.msra.mxu0 %v1989_v19  ;;  %342 = vmatpush1.bf16.msra.mxu1 %v1990_v20  ;;  %v2033_v47 = vld [vmem:[#allocation4 + $0x284] ss:$16 sps:$4 sm:$0xff]   ;;  %v2031_v49 = vld [vmem:[#allocation4 + $0x280] ss:$16 sps:$4 sm:$0xff]  }
  0x39   :  { %300 = vmatprep.subr.bf16.mxu0 %v1991_v21  ;;  %343 = vmatprep.subr.bf16.mxu1 %v1993_v22  ;;  %v2036_v50 = vld [vmem:[#allocation4 + $0x64] ss:$16 sps:$4 sm:$0xff]   ;;  %v2034_v52 = vld [vmem:[#allocation4 + $0x60] ss:$16 sps:$4 sm:$0xff]  }
  0x3a   :  { %v2039_v51 = vld [vmem:[#allocation4 + $0x264] ss:$16 sps:$4 sm:$0xff]   ;;  %v2037_v53 = vld [vmem:[#allocation4 + $0x260] ss:$16 sps:$4 sm:$0xff]  }
  0x3b   :  { %v2042_v54 = vld [vmem:[#allocation4 + $0x44] ss:$16 sps:$4 sm:$0xff]   ;;  %v2040_v56 = vld [vmem:[#allocation4 + $0x40] ss:$16 sps:$4 sm:$0xff]  }
  0x3c   :  { %301 = vmatpush1.bf16.msra.mxu0 %v1995_v23  ;;  %344 = vmatpush1.bf16.msra.mxu1 %v1996_v24  ;;  %v2045_v55 = vld [vmem:[#allocation4 + $0x244] ss:$16 sps:$4 sm:$0xff]   ;;  %v2043_v57 = vld [vmem:[#allocation4 + $0x240] ss:$16 sps:$4 sm:$0xff]  }
  0x3d   :  { %302 = vmatprep.subr.bf16.mxu0 %v1997_v25  ;;  %345 = vmatprep.subr.bf16.mxu1 %v1999_v26  ;;  %v2048_v58 = vld [vmem:[#allocation4 + $0x24] ss:$16 sps:$4 sm:$0xff]   ;;  %v2046_v60 = vld [vmem:[#allocation4 + $0x20] ss:$16 sps:$4 sm:$0xff]  }
  0x3e   :  { %v2051_v59 = vld [vmem:[#allocation4 + $0x224] ss:$16 sps:$4 sm:$0xff]   ;;  %v2049_v61 = vld [vmem:[#allocation4 + $0x220] ss:$16 sps:$4 sm:$0xff]  }
  0x3f   :  { %v2054_v62 = vld [vmem:[#allocation4 + $0x4] ss:$16 sps:$4 sm:$0xff]   ;;  %v2052_v0 = vld [vmem:[#allocation4] ss:$16 sps:$4 sm:$0xff]  }
  0x40   :  { %303 = vmatpush1.bf16.msra.mxu0 %v2001_v27  ;;  %346 = vmatpush1.bf16.msra.mxu1 %v2002_v28  ;;  %v2057_v63 = vld [vmem:[#allocation4 + $0x204] ss:$16 sps:$4 sm:$0xff]   ;;  %v2055_v1 = vld [vmem:[#allocation4 + $0x200] ss:$16 sps:$4 sm:$0xff]  }
  0x41   :  { %304 = vmatprep.subr.bf16.mxu0 %v2003_v29  ;;  %347 = vmatprep.subr.bf16.mxu1 %v2005_v30  ;;  %v2060_v2 = vld [vmem:[#allocation4 + $0x1e4] ss:$16 sps:$4 sm:$0xff]   ;;  %v2058_v4 = vld [vmem:[#allocation4 + $0x1e0] ss:$16 sps:$4 sm:$0xff]  }
  0x42   :  { %v2063_v3 = vld [vmem:[#allocation4 + $0x3e4] ss:$16 sps:$4 sm:$0xff]   ;;  %v2061_v5 = vld [vmem:[#allocation4 + $0x3e0] ss:$16 sps:$4 sm:$0xff]  }
  0x43   :  { %v2066_v6 = vld [vmem:[#allocation4 + $0x1c4] ss:$16 sps:$4 sm:$0xff]   ;;  %v2064_v8 = vld [vmem:[#allocation4 + $0x1c0] ss:$16 sps:$4 sm:$0xff]  }
  0x44   :  { %305 = vmatpush1.bf16.msra.mxu0 %v2007_v31  ;;  %348 = vmatpush1.bf16.msra.mxu1 %v2008_v32  ;;  %v2069_v7 = vld [vmem:[#allocation4 + $0x3c4] ss:$16 sps:$4 sm:$0xff]   ;;  %v2067_v9 = vld [vmem:[#allocation4 + $0x3c0] ss:$16 sps:$4 sm:$0xff]  }
  0x45   :  { %1178 = vmatprep.subr.bf16.mxu0 %v2012_v33  ;;  %1221 = vmatprep.subr.bf16.mxu1 %v2015_v34  ;;  %v2072_v10 = vld [vmem:[#allocation4 + $0x1a4] ss:$16 sps:$4 sm:$0xff]   ;;  %v2070_v12 = vld [vmem:[#allocation4 + $0x1a0] ss:$16 sps:$4 sm:$0xff]   ;;  %v2108_v34 = vld [vmem:[#allocation4 + $0xec] ss:$16 sps:$4 sm:$0xff]  }
  0x46   :  { %v2075_v11 = vld [vmem:[#allocation4 + $0x3a4] ss:$16 sps:$4 sm:$0xff]   ;;  %v2073_v13 = vld [vmem:[#allocation4 + $0x3a0] ss:$16 sps:$4 sm:$0xff]  }
  0x47   :  { %323 = vmatmul.mubr.bf16.vlgmr.msra.gmra.mxu0 %v2009_v35  ;;  %366 = vmatmul.mubr.bf16.vlgmr.msra.gmra.mxu1 %v2009_v35  ;;  %v2078_v14 = vld [vmem:[#allocation4 + $0x184] ss:$16 sps:$4 sm:$0xff]   ;;  %v2076_v16 = vld [vmem:[#allocation4 + $0x180] ss:$16 sps:$4 sm:$0xff]   ;;  %v2111_v35 = vld [vmem:[#allocation4 + $0x2ec] ss:$16 sps:$4 sm:$0xff]  }
  0x48   :  { %1179 = vmatpush1.bf16.msra.mxu0 %v2010_v36  ;;  %1222 = vmatpush1.bf16.msra.mxu1 %v2013_v37  ;;  %v2081_v15 = vld [vmem:[#allocation4 + $0x384] ss:$16 sps:$4 sm:$0xff]   ;;  %v2079_v17 = vld [vmem:[#allocation4 + $0x380] ss:$16 sps:$4 sm:$0xff]   ;;  %v104_v36 = vlaneseq }
  0x49   :  { %1180 = vmatprep.subr.bf16.mxu0 %v2018_v38  ;;  %1223 = vmatprep.subr.bf16.mxu1 %v2021_v39  ;;  %v2084_v18 = vld [vmem:[#allocation4 + $0x164] ss:$16 sps:$4 sm:$0xff]   ;;  %v2082_v20 = vld [vmem:[#allocation4 + $0x160] ss:$16 sps:$4 sm:$0xff]  }
  0x4a   :  { %v2087_v19 = vld [vmem:[#allocation4 + $0x364] ss:$16 sps:$4 sm:$0xff]   ;;  %v2085_v21 = vld [vmem:[#allocation4 + $0x360] ss:$16 sps:$4 sm:$0xff]   ;;  %v2358_v37 = vshrl.u32 %v104_v36, 7 }
  0x4b   :  { %v2090_v22 = vld [vmem:[#allocation4 + $0x144] ss:$16 sps:$4 sm:$0xff]   ;;  %v2088_v24 = vld [vmem:[#allocation4 + $0x140] ss:$16 sps:$4 sm:$0xff]   ;;  %v2145_v36 = vld [vmem:[#allocation4 + $0x228] ss:$16 sps:$4 sm:$0xff]  }
  0x4c   :  { %1181 = vmatpush1.bf16.msra.mxu0 %v2016_v40  ;;  %1224 = vmatpush1.bf16.msra.mxu1 %v2019_v41  ;;  %v2093_v23 = vld [vmem:[#allocation4 + $0x344] ss:$16 sps:$4 sm:$0xff]   ;;  %v2091_v25 = vld [vmem:[#allocation4 + $0x340] ss:$16 sps:$4 sm:$0xff]   ;;  %v110_v38 = vsub.s32 1, %v2358_v37  ;;  %v118_v39 = vsub.s32 3, %v2358_v37 }
  0x4d   :  { %1182 = vmatprep.subr.bf16.mxu0 %v2024_v42  ;;  %1225 = vmatprep.subr.bf16.mxu1 %v2027_v43  ;;  %v2096_v26 = vld [vmem:[#allocation4 + $0x124] ss:$16 sps:$4 sm:$0xff]   ;;  %v2094_v28 = vld [vmem:[#allocation4 + $0x120] ss:$16 sps:$4 sm:$0xff]   ;;  %v106_v40 = vsub.s32 0, %v2358_v37  ;;  %v114_v41 = vsub.s32 2, %v2358_v37 }
  0x4e   :  { %v2099_v27 = vld [vmem:[#allocation4 + $0x324] ss:$16 sps:$4 sm:$0xff]   ;;  %v2097_v29 = vld [vmem:[#allocation4 + $0x320] ss:$16 sps:$4 sm:$0xff]  }
  0x4f   :  { %v2102_v30 = vld [vmem:[#allocation4 + $0x104] ss:$16 sps:$4 sm:$0xff]   ;;  %v2100_v32 = vld [vmem:[#allocation4 + $0x100] ss:$16 sps:$4 sm:$0xff]  }
  0x50   :  { %1183 = vmatpush1.bf16.msra.mxu0 %v2022_v44  ;;  %1226 = vmatpush1.bf16.msra.mxu1 %v2025_v45  ;;  %v2105_v31 = vld [vmem:[#allocation4 + $0x304] ss:$16 sps:$4 sm:$0xff]   ;;  %v2103_v33 = vld [vmem:[#allocation4 + $0x300] ss:$16 sps:$4 sm:$0xff]  }
  0x51   :  { %1184 = vmatprep.subr.bf16.mxu0 %v2030_v46  ;;  %1227 = vmatprep.subr.bf16.mxu1 %v2033_v47  ;;  %v102_v42 = vld [vmem:[%s2405_s2] sm:$0xf] }
  0x52   :  { %v111_v45 = vrot.slane %v102_v42, %v110_v38  ;;  %v119_v46 = vrot.slane %v102_v42, %v118_v39  ;;  %v107_v47 = vrot.slane %v102_v42, %v106_v40 }
  0x54   :  { %1185 = vmatpush1.bf16.msra.mxu0 %v2028_v48  ;;  %1228 = vmatpush1.bf16.msra.mxu1 %v2031_v49  ;;  %v115_v48 = vrot.slane %v102_v42, %v114_v41  ;;  %v2150_v42 = vld [vmem:[#allocation4 + $0xc] ss:$16 sps:$4 sm:$0xff]  }
  0x55   :  { %1186 = vmatprep.subr.bf16.mxu0 %v2036_v50  ;;  %1229 = vmatprep.subr.bf16.mxu1 %v2039_v51 }
  0x58   :  { %1187 = vmatpush1.bf16.msra.mxu0 %v2034_v52  ;;  %1230 = vmatpush1.bf16.msra.mxu1 %v2037_v53 }
  0x59   :  { %1188 = vmatprep.subr.bf16.mxu0 %v2042_v54  ;;  %1231 = vmatprep.subr.bf16.mxu1 %v2045_v55 }
  0x5c   :  { %1189 = vmatpush1.bf16.msra.mxu0 %v2040_v56  ;;  %1232 = vmatpush1.bf16.msra.mxu1 %v2043_v57 }
  0x5d   :  { %1190 = vmatprep.subr.bf16.mxu0 %v2048_v58  ;;  %1233 = vmatprep.subr.bf16.mxu1 %v2051_v59 }
  0x60   :  { %1191 = vmatpush1.bf16.msra.mxu0 %v2046_v60  ;;  %1234 = vmatpush1.bf16.msra.mxu1 %v2049_v61 }
  0x61   :  { %1192 = vmatprep.subr.bf16.mxu0 %v2054_v62  ;;  %1235 = vmatprep.subr.bf16.mxu1 %v2057_v63 }
  0x64   :  { %1193 = vmatpush1.bf16.msra.mxu0 %v2052_v0  ;;  %1236 = vmatpush1.bf16.msra.mxu1 %v2055_v1 }
  0x65   :  { %1194 = vmatprep.subr.bf16.mxu0 %v2060_v2  ;;  %1237 = vmatprep.subr.bf16.mxu1 %v2063_v3 }
  0x68   :  { %1195 = vmatpush2.bf16.msra.mxu0 %v2058_v4  ;;  %1238 = vmatpush2.bf16.msra.mxu1 %v2061_v5 }
  0x69   :  { %1196 = vmatprep.subr.bf16.mxu0 %v2066_v6  ;;  %1239 = vmatprep.subr.bf16.mxu1 %v2069_v7 }
  0x6c   :  { %1197 = vmatpush2.bf16.msra.mxu0 %v2064_v8  ;;  %1240 = vmatpush2.bf16.msra.mxu1 %v2067_v9  ;;  %v2106_v9 = vld [vmem:[#allocation4 + $0xe8] ss:$16 sps:$4 sm:$0xff]  }
  0x6d   :  { %1198 = vmatprep.subr.bf16.mxu0 %v2072_v10  ;;  %1241 = vmatprep.subr.bf16.mxu1 %v2075_v11  ;;  %v2109_v10 = vld [vmem:[#allocation4 + $0x2e8] ss:$16 sps:$4 sm:$0xff]  }
  0x70   :  { %1199 = vmatpush2.bf16.msra.mxu0 %v2070_v12  ;;  %1242 = vmatpush2.bf16.msra.mxu1 %v2073_v13  ;;  %v2114_v13 = vld [vmem:[#allocation4 + $0xcc] ss:$16 sps:$4 sm:$0xff]  }
  0x71   :  { %1200 = vmatprep.subr.bf16.mxu0 %v2078_v14  ;;  %1243 = vmatprep.subr.bf16.mxu1 %v2081_v15  ;;  %v2117_v14 = vld [vmem:[#allocation4 + $0x2cc] ss:$16 sps:$4 sm:$0xff]   ;;  %v2112_v15 = vld [vmem:[#allocation4 + $0xc8] ss:$16 sps:$4 sm:$0xff]  }
  0x74   :  { %1201 = vmatpush2.bf16.msra.mxu0 %v2076_v16  ;;  %1244 = vmatpush2.bf16.msra.mxu1 %v2079_v17  ;;  %v2115_v16 = vld [vmem:[#allocation4 + $0x2c8] ss:$16 sps:$4 sm:$0xff]   ;;  %v2120_v17 = vld [vmem:[#allocation4 + $0xac] ss:$16 sps:$4 sm:$0xff]  }
  0x75   :  { %1202 = vmatprep.subr.bf16.mxu0 %v2084_v18  ;;  %1245 = vmatprep.subr.bf16.mxu1 %v2087_v19  ;;  %v2123_v18 = vld [vmem:[#allocation4 + $0x2ac] ss:$16 sps:$4 sm:$0xff]   ;;  %v2118_v19 = vld [vmem:[#allocation4 + $0xa8] ss:$16 sps:$4 sm:$0xff]  }
  0x78   :  { %1203 = vmatpush2.bf16.msra.mxu0 %v2082_v20  ;;  %1246 = vmatpush2.bf16.msra.mxu1 %v2085_v21  ;;  %v2121_v20 = vld [vmem:[#allocation4 + $0x2a8] ss:$16 sps:$4 sm:$0xff]   ;;  %v2126_v21 = vld [vmem:[#allocation4 + $0x8c] ss:$16 sps:$4 sm:$0xff]  }
  0x79   :  { %1204 = vmatprep.subr.bf16.mxu0 %v2090_v22  ;;  %1247 = vmatprep.subr.bf16.mxu1 %v2093_v23  ;;  %v2129_v22 = vld [vmem:[#allocation4 + $0x28c] ss:$16 sps:$4 sm:$0xff]   ;;  %v2124_v23 = vld [vmem:[#allocation4 + $0x88] ss:$16 sps:$4 sm:$0xff]  }
  0x7c   :  { %1205 = vmatpush2.bf16.msra.mxu0 %v2088_v24  ;;  %1248 = vmatpush2.bf16.msra.mxu1 %v2091_v25  ;;  %v2127_v24 = vld [vmem:[#allocation4 + $0x288] ss:$16 sps:$4 sm:$0xff]   ;;  %v2132_v25 = vld [vmem:[#allocation4 + $0x6c] ss:$16 sps:$4 sm:$0xff]  }
  0x7d   :  { %1206 = vmatprep.subr.bf16.mxu0 %v2096_v26  ;;  %1249 = vmatprep.subr.bf16.mxu1 %v2099_v27  ;;  %v2135_v26 = vld [vmem:[#allocation4 + $0x26c] ss:$16 sps:$4 sm:$0xff]   ;;  %v2130_v27 = vld [vmem:[#allocation4 + $0x68] ss:$16 sps:$4 sm:$0xff]  }
  0x80   :  { %1207 = vmatpush2.bf16.msra.mxu0 %v2094_v28  ;;  %1250 = vmatpush2.bf16.msra.mxu1 %v2097_v29  ;;  %v2133_v28 = vld [vmem:[#allocation4 + $0x268] ss:$16 sps:$4 sm:$0xff]   ;;  %v2138_v29 = vld [vmem:[#allocation4 + $0x4c] ss:$16 sps:$4 sm:$0xff]  }
  0x81   :  { %1208 = vmatprep.subr.bf16.mxu0 %v2102_v30  ;;  %1251 = vmatprep.subr.bf16.mxu1 %v2105_v31  ;;  %v2141_v30 = vld [vmem:[#allocation4 + $0x24c] ss:$16 sps:$4 sm:$0xff]   ;;  %v2136_v31 = vld [vmem:[#allocation4 + $0x48] ss:$16 sps:$4 sm:$0xff]  }
  0x84   :  { %1209 = vmatpush2.bf16.msra.mxu0 %v2100_v32  ;;  %1252 = vmatpush2.bf16.msra.mxu1 %v2103_v33  ;;  %v2139_v32 = vld [vmem:[#allocation4 + $0x248] ss:$16 sps:$4 sm:$0xff]   ;;  %v2144_v33 = vld [vmem:[#allocation4 + $0x2c] ss:$16 sps:$4 sm:$0xff]  }
  0x85   :  { %1264 = vmatprep.subr.bf16.mxu0 %v2108_v34  ;;  %1307 = vmatprep.subr.bf16.mxu1 %v2111_v35  ;;  %v2147_v34 = vld [vmem:[#allocation4 + $0x22c] ss:$16 sps:$4 sm:$0xff]   ;;  %v2142_v35 = vld [vmem:[#allocation4 + $0x28] ss:$16 sps:$4 sm:$0xff]  }
 0x107   :  { %v324_v43 = vpop.f32.mrf.mxu0  ;;  %v367_v44 = vpop.f32.mrf.mxu1 }
 0x108   :  { %v325_v57 = vadd.f32 %v324_v43, %v107_v47  ;;  %v368_v58 = vadd.f32 %v367_v44, %v115_v48  ;;  %v2153_v43 = vld [vmem:[#allocation4 + $0x20c] ss:$16 sps:$4 sm:$0xff]   ;;  %v2148_v44 = vld [vmem:[#allocation4 + $0x8] ss:$16 sps:$4 sm:$0xff]  }
 0x109   :  { %v326_v49 = vpop.f32.mrf.mxu0  ;;  %v369_v50 = vpop.f32.mrf.mxu1 }
 0x10a   :  { %v327_v53 = vadd.f32 %v326_v49, %v111_v45  ;;  %v370_v54 = vadd.f32 %v369_v50, %v119_v46  ;;  %v376_v5 = vmax.f32 %v325_v57, 0.0  ;;  %v378_v6 = vmax.f32 %v368_v58, 0.0  ;;  %v2157_v49 = vld [vmem:[#allocation4 + $0x3e8] ss:$16 sps:$4 sm:$0xff]   ;;  %v2162_v50 = vld [vmem:[#allocation4 + $0x1cc] ss:$16 sps:$4 sm:$0xff]  }
 0x10b   :  { %v328_v51 = vpop.f32.mrf.mxu0  ;;  %v371_v52 = vpop.f32.mrf.mxu1  ;;  %v2169_v57 = vld [vmem:[#allocation4 + $0x3a8] ss:$16 sps:$4 sm:$0xff]   ;;  %v2174_v58 = vld [vmem:[#allocation4 + $0x18c] ss:$16 sps:$4 sm:$0xff]  }
 0x10c   :  { %v329_v55 = vadd.f32 %v328_v51, %v107_v47  ;;  %v372_v56 = vadd.f32 %v371_v52, %v115_v48  ;;  %v377_v1 = vmax.f32 %v327_v53, 0.0  ;;  %v379_v2 = vmax.f32 %v370_v54, 0.0  ;;  %v2159_v47 = vld [vmem:[#allocation4 + $0x3ec] ss:$16 sps:$4 sm:$0xff]   ;;  %v2154_v48 = vld [vmem:[#allocation4 + $0x1e8] ss:$16 sps:$4 sm:$0xff]  }
 0x10d   :  { %v330_v59 = vpop.f32.mrf.mxu0  ;;  %v373_v60 = vpop.f32.mrf.mxu1  ;;  %v2165_v51 = vld [vmem:[#allocation4 + $0x3cc] ss:$16 sps:$4 sm:$0xff]   ;;  %v2160_v52 = vld [vmem:[#allocation4 + $0x1c8] ss:$16 sps:$4 sm:$0xff]  }
 0x10e   :  { %v331_v61 = vadd.f32 %v330_v59, %v111_v45  ;;  %v374_v62 = vadd.f32 %v373_v60, %v119_v46  ;;  %v380_v63 = vmax.f32 %v329_v55, 0.0  ;;  %v382_v0 = vmax.f32 %v372_v56, 0.0  ;;  %v2151_v45 = vld [vmem:[#allocation4 + $0x208] ss:$16 sps:$4 sm:$0xff]   ;;  %v2156_v46 = vld [vmem:[#allocation4 + $0x1ec] ss:$16 sps:$4 sm:$0xff]  }
 0x10f   :  { %v2163_v53 = vld [vmem:[#allocation4 + $0x3c8] ss:$16 sps:$4 sm:$0xff]   ;;  %v2168_v54 = vld [vmem:[#allocation4 + $0x1ac] ss:$16 sps:$4 sm:$0xff]  }
 0x110   :  { %v381_v3 = vmax.f32 %v331_v61, 0.0  ;;  %v383_v4 = vmax.f32 %v374_v62, 0.0  ;;  %v2375_v11 = vpack.c.bf16 %v380_v63, %v376_v5  ;;  %v2377_v12 = vpack.c.bf16 %v382_v0, %v378_v6  ;;  %v2171_v55 = vld [vmem:[#allocation4 + $0x3ac] ss:$16 sps:$4 sm:$0xff]   ;;  %v2166_v56 = vld [vmem:[#allocation4 + $0x1a8] ss:$16 sps:$4 sm:$0xff]  }
 0x111   :  { %v2177_v59 = vld [vmem:[#allocation4 + $0x38c] ss:$16 sps:$4 sm:$0xff]   ;;  %v2172_v60 = vld [vmem:[#allocation4 + $0x188] ss:$16 sps:$4 sm:$0xff]  }
 0x112   :  { %v385_v7 = vpack.c.bf16 %v381_v3, %v377_v1  ;;  %v387_v8 = vpack.c.bf16 %v383_v4, %v379_v2  ;;  %v2175_v61 = vld [vmem:[#allocation4 + $0x388] ss:$16 sps:$4 sm:$0xff]   ;;  %v2180_v62 = vld [vmem:[#allocation4 + $0x16c] ss:$16 sps:$4 sm:$0xff]  }
 0x113   :  { %v2183_v63 = vld [vmem:[#allocation4 + $0x36c] ss:$16 sps:$4 sm:$0xff]   ;;  %v2178_v0 = vld [vmem:[#allocation4 + $0x168] ss:$16 sps:$4 sm:$0xff]  }
 0x114   :  { %1210 = vmatprep.mubr.bf16.mxu0 %v385_v7  ;;  %1253 = vmatprep.mubr.bf16.mxu1 %v387_v8  ;;  %v2181_v1 = vld [vmem:[#allocation4 + $0x368] ss:$16 sps:$4 sm:$0xff]   ;;  %v2186_v2 = vld [vmem:[#allocation4 + $0x14c] ss:$16 sps:$4 sm:$0xff]  }
 0x115   :  { %1211 = vmatmul.mubr.bf16.vlgmr.msra.gmra.mxu0 %v2375_v11  ;;  %1254 = vmatmul.mubr.bf16.vlgmr.msra.gmra.mxu1 %v2377_v12  ;;  %v2189_v3 = vld [vmem:[#allocation4 + $0x34c] ss:$16 sps:$4 sm:$0xff]   ;;  %v2184_v4 = vld [vmem:[#allocation4 + $0x148] ss:$16 sps:$4 sm:$0xff]  }
 0x116   :  { %1265 = vmatpush1.bf16.msra.mxu0 %v2106_v9  ;;  %1308 = vmatpush1.bf16.msra.mxu1 %v2109_v10  ;;  %v2187_v5 = vld [vmem:[#allocation4 + $0x348] ss:$16 sps:$4 sm:$0xff]   ;;  %v2192_v6 = vld [vmem:[#allocation4 + $0x12c] ss:$16 sps:$4 sm:$0xff]  }
 0x117   :  { %1296 = vmatprep.mubr.bf16.mxu0 %v385_v7  ;;  %1339 = vmatprep.mubr.bf16.mxu1 %v387_v8  ;;  %v2195_v7 = vld [vmem:[#allocation4 + $0x32c] ss:$16 sps:$4 sm:$0xff]   ;;  %v2190_v8 = vld [vmem:[#allocation4 + $0x128] ss:$16 sps:$4 sm:$0xff]  }
 0x118   :  { %1266 = vmatprep.subr.bf16.mxu0 %v2114_v13  ;;  %1309 = vmatprep.subr.bf16.mxu1 %v2117_v14  ;;  %v2193_v9 = vld [vmem:[#allocation4 + $0x328] ss:$16 sps:$4 sm:$0xff]   ;;  %v2198_v10 = vld [vmem:[#allocation4 + $0x10c] ss:$16 sps:$4 sm:$0xff]  }
 0x119   :  { %v2201_v13 = vld [vmem:[#allocation4 + $0x30c] ss:$16 sps:$4 sm:$0xff]   ;;  %v2196_v14 = vld [vmem:[#allocation4 + $0x108] ss:$16 sps:$4 sm:$0xff]  }
 0x11a   :  { %1267 = vmatpush1.bf16.msra.mxu0 %v2112_v15  ;;  %1310 = vmatpush1.bf16.msra.mxu1 %v2115_v16  ;;  %v2199_v15 = vld [vmem:[#allocation4 + $0x308] ss:$16 sps:$4 sm:$0xff]  }
 0x11b   :  { %1268 = vmatprep.subr.bf16.mxu0 %v2120_v17  ;;  %1311 = vmatprep.subr.bf16.mxu1 %v2123_v18  ;;  %v2202_v16 = vld [vmem:[#allocation6 + $0x78] sm:$0xff]   ;;  %v2204_v18 = vld [vmem:[#allocation6 + $0x70] sm:$0xff]  }
 0x11c   :  { %v2203_v17 = vld [vmem:[#allocation6 + $0x38] sm:$0xff]  }
 0x11e   :  { %1269 = vmatpush1.bf16.msra.mxu0 %v2118_v19  ;;  %1312 = vmatpush1.bf16.msra.mxu1 %v2121_v20  ;;  %v2205_v19 = vld [vmem:[#allocation6 + $0x30] sm:$0xff]   ;;  %v2206_v20 = vld [vmem:[#allocation6 + $0x68] sm:$0xff]  }
 0x11f   :  { %1270 = vmatprep.subr.bf16.mxu0 %v2126_v21  ;;  %1313 = vmatprep.subr.bf16.mxu1 %v2129_v22  ;;  %v2207_v21 = vld [vmem:[#allocation6 + $0x28] sm:$0xff]   ;;  %v2208_v22 = vld [vmem:[#allocation6 + $0x60] sm:$0xff]  }
 0x122   :  { %1271 = vmatpush1.bf16.msra.mxu0 %v2124_v23  ;;  %1314 = vmatpush1.bf16.msra.mxu1 %v2127_v24  ;;  %v2209_v23 = vld [vmem:[#allocation6 + $0x20] sm:$0xff]   ;;  %v2210_v24 = vld [vmem:[#allocation6 + $0x58] sm:$0xff]  }
 0x123   :  { %1272 = vmatprep.subr.bf16.mxu0 %v2132_v25  ;;  %1315 = vmatprep.subr.bf16.mxu1 %v2135_v26  ;;  %v2211_v25 = vld [vmem:[#allocation6 + $0x18] sm:$0xff]   ;;  %v2212_v26 = vld [vmem:[#allocation6 + $0x50] sm:$0xff]  }
 0x126   :  { %1273 = vmatpush1.bf16.msra.mxu0 %v2130_v27  ;;  %1316 = vmatpush1.bf16.msra.mxu1 %v2133_v28  ;;  %v2218_v27 = vld [vmem:[#allocation6 + $0xf8] sm:$0xff]   ;;  %v2220_v28 = vld [vmem:[#allocation6 + $0xf0] sm:$0xff]  }
 0x127   :  { %1274 = vmatprep.subr.bf16.mxu0 %v2138_v29  ;;  %1317 = vmatprep.subr.bf16.mxu1 %v2141_v30  ;;  %v2214_v29 = vld [vmem:[#allocation6 + $0x48] sm:$0xff]   ;;  %v2221_v30 = vld [vmem:[#allocation6 + $0xb0] sm:$0xff]  }
 0x12a   :  { %1275 = vmatpush1.bf16.msra.mxu0 %v2136_v31  ;;  %1318 = vmatpush1.bf16.msra.mxu1 %v2139_v32  ;;  %v2222_v31 = vld [vmem:[#allocation6 + $0xe8] sm:$0xff]  }
 0x12b   :  { %1276 = vmatprep.subr.bf16.mxu0 %v2144_v33  ;;  %1319 = vmatprep.subr.bf16.mxu1 %v2147_v34  ;;  %v2215_v32 = vld [vmem:[#allocation6 + $0x8] sm:$0xff]   ;;  %v2216_v33 = vld [vmem:[#allocation6 + $0x40] sm:$0xff]  }
 0x12c   :  { %v2223_v34 = vld [vmem:[#allocation6 + $0xa8] sm:$0xff]  }
 0x12e   :  { %1277 = vmatpush1.bf16.msra.mxu0 %v2142_v35  ;;  %1320 = vmatpush1.bf16.msra.mxu1 %v2145_v36  ;;  %v2224_v35 = vld [vmem:[#allocation6 + $0xe0] sm:$0xff]  }
 0x12f   :  { %1278 = vmatprep.subr.bf16.mxu0 %v2150_v42  ;;  %1321 = vmatprep.subr.bf16.mxu1 %v2153_v43  ;;  %v2217_v36 = vld [vmem:[#allocation6] sm:$0xff]   ;;  %v2226_v43 = vld [vmem:[#allocation6 + $0xd8] sm:$0xff]  }
 0x130   :  { %v2225_v42 = vld [vmem:[#allocation6 + $0xa0] sm:$0xff]  }
 0x132   :  { %1279 = vmatpush1.bf16.msra.mxu0 %v2148_v44  ;;  %1322 = vmatpush1.bf16.msra.mxu1 %v2151_v45  ;;  %v2227_v44 = vld [vmem:[#allocation6 + $0x98] sm:$0xff]   ;;  %v2228_v45 = vld [vmem:[#allocation6 + $0xd0] sm:$0xff]  }
 0x133   :  { %1280 = vmatprep.subr.bf16.mxu0 %v2156_v46  ;;  %1323 = vmatprep.subr.bf16.mxu1 %v2159_v47  ;;  %v2229_v46 = vld [vmem:[#allocation6 + $0x90] sm:$0xff]   ;;  %v2230_v47 = vld [vmem:[#allocation6 + $0xc8] sm:$0xff]  }
 0x136   :  { %1281 = vmatpush2.bf16.msra.mxu0 %v2154_v48  ;;  %1324 = vmatpush2.bf16.msra.mxu1 %v2157_v49  ;;  %v2231_v48 = vld [vmem:[#allocation6 + $0x88] sm:$0xff]   ;;  %v2232_v49 = vld [vmem:[#allocation6 + $0xc0] sm:$0xff]  }
 0x137   :  { %1282 = vmatprep.subr.bf16.mxu0 %v2162_v50  ;;  %1325 = vmatprep.subr.bf16.mxu1 %v2165_v51  ;;  %v2233_v50 = vld [vmem:[#allocation6 + $0x80] sm:$0xff]  }
 0x138   :  { %v516_v51 = vld [vmem:[%s2407_s4] sm:$0xf] }
 0x13a   :  { %1283 = vmatpush2.bf16.msra.mxu0 %v2160_v52  ;;  %1326 = vmatpush2.bf16.msra.mxu1 %v2163_v53  ;;  %v525_v52 = vrot.slane %v516_v51, %v110_v38  ;;  %v521_v53 = vrot.slane %v516_v51, %v106_v40 }
 0x13b   :  { %1284 = vmatprep.subr.bf16.mxu0 %v2168_v54  ;;  %1327 = vmatprep.subr.bf16.mxu1 %v2171_v55 }
 0x13e   :  { %1285 = vmatpush2.bf16.msra.mxu0 %v2166_v56  ;;  %1328 = vmatpush2.bf16.msra.mxu1 %v2169_v57 }
 0x13f   :  { %1286 = vmatprep.subr.bf16.mxu0 %v2174_v58  ;;  %1329 = vmatprep.subr.bf16.mxu1 %v2177_v59 }
 0x142   :  { %1287 = vmatpush2.bf16.msra.mxu0 %v2172_v60  ;;  %1330 = vmatpush2.bf16.msra.mxu1 %v2175_v61 }
 0x143   :  { %1288 = vmatprep.subr.bf16.mxu0 %v2180_v62  ;;  %1331 = vmatprep.subr.bf16.mxu1 %v2183_v63 }
 0x146   :  { %1289 = vmatpush2.bf16.msra.mxu0 %v2178_v0  ;;  %1332 = vmatpush2.bf16.msra.mxu1 %v2181_v1 }
 0x147   :  { %1290 = vmatprep.subr.bf16.mxu0 %v2186_v2  ;;  %1333 = vmatprep.subr.bf16.mxu1 %v2189_v3 }
 0x14a   :  { %1291 = vmatpush2.bf16.msra.mxu0 %v2184_v4  ;;  %1334 = vmatpush2.bf16.msra.mxu1 %v2187_v5 }
 0x14b   :  { %1292 = vmatprep.subr.bf16.mxu0 %v2192_v6  ;;  %1335 = vmatprep.subr.bf16.mxu1 %v2195_v7 }
 0x14e   :  { %1293 = vmatpush2.bf16.msra.mxu0 %v2190_v8  ;;  %1336 = vmatpush2.bf16.msra.mxu1 %v2193_v9 }
 0x14f   :  { %1294 = vmatprep.subr.bf16.mxu0 %v2198_v10  ;;  %1337 = vmatprep.subr.bf16.mxu1 %v2201_v13  ;;  %v533_v10 = vrot.slane %v516_v51, %v118_v39  ;;  %v529_v13 = vrot.slane %v516_v51, %v114_v41 }
 0x152   :  { %1295 = vmatpush2.bf16.msra.mxu0 %v2196_v14  ;;  %1338 = vmatpush2.bf16.msra.mxu1 %v2199_v15 }
 0x153   :  { %1909 = vmatprep.subr.bf16.mxu0 %v2202_v16  ;;  %1931 = vmatprep.subr.bf16.mxu1 %v2218_v27 }
 0x155   :  { %1297 = vmatmul.mubr.bf16.vlgmr.msra.gmra.mxu0 %v2375_v11  ;;  %1340 = vmatmul.mubr.bf16.vlgmr.msra.gmra.mxu1 %v2377_v12  ;;  %v2219_v11 = vld [vmem:[#allocation6 + $0xb8] sm:$0xff]   ;;  %v2213_v12 = vld [vmem:[#allocation6 + $0x10] sm:$0xff]  }
 0x156   :  { %1910 = vmatpush3.bf16.msra.mxu0 %v2203_v17  ;;  %1932 = vmatpush3.bf16.msra.mxu1 %v2219_v11 }
 0x157   :  { %1911 = vmatprep.subr.bf16.mxu0 %v2204_v18  ;;  %1933 = vmatprep.subr.bf16.mxu1 %v2220_v28 }
 0x15a   :  { %1912 = vmatpush3.bf16.msra.mxu0 %v2205_v19  ;;  %1934 = vmatpush3.bf16.msra.mxu1 %v2221_v30 }
 0x15b   :  { %1913 = vmatprep.subr.bf16.mxu0 %v2206_v20  ;;  %1935 = vmatprep.subr.bf16.mxu1 %v2222_v31 }
 0x15e   :  { %1914 = vmatpush3.bf16.msra.mxu0 %v2207_v21  ;;  %1936 = vmatpush3.bf16.msra.mxu1 %v2223_v34 }
 0x15f   :  { %1915 = vmatprep.subr.bf16.mxu0 %v2208_v22  ;;  %1937 = vmatprep.subr.bf16.mxu1 %v2224_v35  ;;  %v1876_v35 = vld [vmem:[%s2409_s6] ss:$0 sm:$0xff] }
 0x162   :  { %1916 = vmatpush3.bf16.msra.mxu0 %v2209_v23  ;;  %1938 = vmatpush3.bf16.msra.mxu1 %v2225_v42 }
 0x163   :  { %1917 = vmatprep.subr.bf16.mxu0 %v2210_v24  ;;  %1939 = vmatprep.subr.bf16.mxu1 %v2226_v43 }
 0x166   :  { %1918 = vmatpush3.bf16.msra.mxu0 %v2211_v25  ;;  %1940 = vmatpush3.bf16.msra.mxu1 %v2227_v44 }
 0x167   :  { %1919 = vmatprep.subr.bf16.mxu0 %v2212_v26  ;;  %1941 = vmatprep.subr.bf16.mxu1 %v2228_v45 }
 0x16a   :  { %1920 = vmatpush3.bf16.msra.mxu0 %v2213_v12  ;;  %1942 = vmatpush3.bf16.msra.mxu1 %v2229_v46 }
 0x16b   :  { %1921 = vmatprep.subr.bf16.mxu0 %v2214_v29  ;;  %1943 = vmatprep.subr.bf16.mxu1 %v2230_v47 }
 0x16e   :  { %1922 = vmatpush3.bf16.msra.mxu0 %v2215_v32  ;;  %1944 = vmatpush3.bf16.msra.mxu1 %v2231_v48 }
 0x16f   :  { %1923 = vmatprep.subr.bf16.mxu0 %v2216_v33  ;;  %1945 = vmatprep.subr.bf16.mxu1 %v2232_v49 }
 0x172   :  { %1924 = vmatpush3.bf16.msra.mxu0 %v2217_v36  ;;  %1946 = vmatpush3.bf16.msra.mxu1 %v2233_v50 }
 0x1d5   :  { %v1212_v54 = vpop.f32.mrf.mxu0  ;;  %v1255_v55 = vpop.f32.mrf.mxu1 }
 0x1d6   :  { %v1213_v59 = vadd.f32 %v1212_v54, %v521_v53 }
 0x1d7   :  { %v1214_v56 = vpop.f32.mrf.mxu0  ;;  %v1257_v57 = vpop.f32.mrf.mxu1 }
 0x1d8   :  { %v1215_v58 = vadd.f32 %v1214_v56, %v525_v52  ;;  %v1256_v3 = vadd.f32 %v1255_v55, %v1213_v59 }
 0x1d9   :  { %v1216_v60 = vpop.f32.mrf.mxu0  ;;  %v1259_v61 = vpop.f32.mrf.mxu1 }
 0x1da   :  { %v1217_v62 = vadd.f32 %v1216_v60, %v521_v53  ;;  %v1258_v0 = vadd.f32 %v1257_v57, %v1215_v58  ;;  %v1350_v40 = vmax.f32 %v1256_v3, 0.0 }
 0x1db   :  { %v1218_v63 = vpop.f32.mrf.mxu0  ;;  %v1261_v4 = vpop.f32.mrf.mxu1 }
 0x1dc   :  { %v1260_v1 = vadd.f32 %v1259_v61, %v1217_v62  ;;  %v1219_v2 = vadd.f32 %v1218_v63, %v525_v52  ;;  %v1351_v6 = vmax.f32 %v1258_v0, 0.0 }
 0x1de   :  { %v1262_v5 = vadd.f32 %v1261_v4, %v1219_v2  ;;  %v1354_v38 = vmax.f32 %v1260_v1, 0.0 }
 0x1e0   :  { %v1355_v7 = vmax.f32 %v1262_v5, 0.0  ;;  %v1358_v9 = vpack.c.bf16 %v1354_v38, %v1350_v40 }
 0x1e2   :  { %v1359_v8 = vpack.c.bf16 %v1355_v7, %v1351_v6 }
 0x1e4   :  { %1657 = vmatprep.mubr.bf16.mxu0 %v1359_v8 }
 0x1e5   :  { %1658 = vmatmul.mubr.bf16.vlgmr.msra.gmra.mxu0 %v1358_v9 }
 0x215   :  { %v1298_v14 = vpop.f32.mrf.mxu0  ;;  %v1341_v15 = vpop.f32.mrf.mxu1 }
 0x216   :  { %v1299_v19 = vadd.f32 %v1298_v14, %v529_v13 }
 0x217   :  { %v1300_v16 = vpop.f32.mrf.mxu0  ;;  %v1343_v17 = vpop.f32.mrf.mxu1 }
 0x218   :  { %v1301_v18 = vadd.f32 %v1300_v16, %v533_v10  ;;  %v1342_v27 = vadd.f32 %v1341_v15, %v1299_v19 }
 0x219   :  { %v1302_v20 = vpop.f32.mrf.mxu0  ;;  %v1345_v21 = vpop.f32.mrf.mxu1 }
 0x21a   :  { %v1303_v22 = vadd.f32 %v1302_v20, %v529_v13  ;;  %v1344_v24 = vadd.f32 %v1343_v17, %v1301_v18  ;;  %v1352_v41 = vmax.f32 %v1342_v27, 0.0 }
 0x21b   :  { %v1304_v23 = vpop.f32.mrf.mxu0  ;;  %v1347_v11 = vpop.f32.mrf.mxu1 }
 0x21c   :  { %v1346_v25 = vadd.f32 %v1345_v21, %v1303_v22  ;;  %v1305_v26 = vadd.f32 %v1304_v23, %v533_v10  ;;  %v1353_v12 = vmax.f32 %v1344_v24, 0.0 }
 0x21e   :  { %v1348_v28 = vadd.f32 %v1347_v11, %v1305_v26  ;;  %v1356_v39 = vmax.f32 %v1346_v25, 0.0 }
 0x220   :  { %v1357_v37 = vmax.f32 %v1348_v28, 0.0  ;;  %v1360_v30 = vpack.c.bf16 %v1356_v39, %v1352_v41 }
 0x222   :  { %v1361_v29 = vpack.c.bf16 %v1357_v37, %v1353_v12 }
 0x224   :  { %1698 = vmatprep.mubr.bf16.mxu1 %v1361_v29 }
 0x225   :  { %1699 = vmatmul.mubr.bf16.vlgmr.msra.gmra.mxu1 %v1360_v30 }
 0x2a5   :  { %v1925_v31 = vpop.f32.mrf.mxu0 }
 0x2a7   :  { %v1926_v32 = vpop.f32.mrf.mxu0 }
 0x2a8   :  { %v1927_v34 = vadd.f32 %v1926_v32, %v1925_v31 }
 0x2a9   :  { %v1928_v33 = vpop.f32.mrf.mxu0 }
 0x2aa   :  { %v1660_v44 = vadd.f32 %v1927_v34, %v1876_v35 }
 0x2ab   :  { %v1929_v36 = vpop.f32.mrf.mxu0 }
 0x2ac   :  { %v1930_v45 = vadd.f32 %v1929_v36, %v1928_v33 }
 0x2ae   :  { %v1663_v50 = vadd.f32 %v1930_v45, %v1876_v35 }
 0x2e5   :  { %v1947_v42 = vpop.f32.mrf.mxu1 }
 0x2e7   :  { %v1948_v43 = vpop.f32.mrf.mxu1 }
 0x2e8   :  { %v1949_v46 = vadd.f32 %v1948_v43, %v1947_v42 }
 0x2e9   :  { %v1950_v47 = vpop.f32.mrf.mxu1 }
 0x2ea   :  { %v1701_v48 = vadd.f32 %v1949_v46, %v1660_v44 }
 0x2eb   :  { %v1951_v49 = vpop.f32.mrf.mxu1 }
 0x2ec   :  { %1707 = vst [vmem:[%s2410_s7] sm:$0xff] %v1701_v48  ;;  %v1952_v51 = vadd.f32 %v1951_v49, %v1950_v47 }
 0x2ee   :  { %v1704_v52 = vadd.f32 %v1952_v51, %v1663_v50 }
 0x2f0   :  { %1708 = vst [vmem:[%s2410_s7 + $0x8] sm:$0xff] %v1704_v52 }
 0x2f1   :  { %1713 = vsyncpa [#allocation3], 1 }
 0x2f2   :  { %1714 = vsyncpa [#allocation5], 1 }

</bundles_post_ra>
